<compile_context>
chip_gen: v5e
topology: v5e:2x2
jax: 0.10.0
libtpu: 0.0.40
codegen_flags: <defaults>
</compile_context>

<pallas_src>
import functools

import jax
import jax.numpy as jnp
import numpy as np
from jax import lax
from jax.experimental import pallas as pl
from jax.experimental.pallas import tpu as pltpu


def _round_up(x, m):
    return ((x + m - 1) // m) * m


def _vmem_capacity_bytes():
    try:
        return int(pltpu.get_tpu_info().vmem_capacity_bytes)
    except Exception:
        return 64 * 1024 * 1024   # conservative fallback (v7x per-core)


def _num_tensorcores():
    """Best-effort TensorCore count for the local device (1 is always safe)."""
    try:
        info = pltpu.get_tpu_info()
        for attr in ("num_cores", "core_count", "num_tensorcores",
                     "tensorcore_count", "num_tensor_cores"):
            v = getattr(info, attr, None)
            if v:
                return max(1, int(v))
    except Exception:
        pass
    try:
        d = jax.devices()[0]
        for attr in ("num_cores", "core_count"):
            v = getattr(d, attr, None)
            if v:
                return max(1, int(v))
        kind = str(getattr(d, "device_kind", "")).lower()
        # Dual-TensorCore chips (megacore v4/v5p, v7x). v5e/v6e stay at 1.
        if any(tag in kind for tag in ("v4", "v5p", "v7", "tpu7")):
            return 2
    except Exception:
        pass
    return 1


def _dice_sums_kernel(p_ref, t_ref, o_ref, *, s_total, tile, sps,
                      first_masked, need_mask):
    """Accumulate [intersection, pred_sum + target_sum] per row.

    p_ref, t_ref : (rows, tile) tiles of the flattened inputs (native dtype).
    o_ref        : (rows, 2) accumulator block, resident across the spatial
                   ("arbitrary") grid axis; one block per parallel split.
    """
    par = pl.program_id(0)       # parallel spatial split
    s = pl.program_id(1)         # spatial tile within the split

    # Zero the accumulator on the first spatial tile of this split.
    @pl.when(s == 0)
    def _():
        o_ref[...] = jnp.zeros_like(o_ref)

    def accumulate(p, t):
        # Fused: the loss only ever needs sum(p)+sum(t), so reduce p+t once.
        o_ref[:, 0:1] += jnp.sum(p * t, axis=1, keepdims=True)
        o_ref[:, 1:2] += jnp.sum(p + t, axis=1, keepdims=True)

    if need_mask:
        lin = par * sps + s

        # Unmasked fast path for all interior tiles.
        @pl.when(lin < first_masked)
        def _():
            accumulate(p_ref[...].astype(jnp.float32),
                       t_ref[...].astype(jnp.float32))

        # Masked path: tail tile and any redundant clamped tiles of the last
        # parallel split.  Mask BEFORE any arithmetic so garbage in the padded
        # region of the DMA'd buffer cannot propagate.
        @pl.when(lin >= first_masked)
        def _():
            p = p_ref[...].astype(jnp.float32)
            t = t_ref[...].astype(jnp.float32)
            col = lin * tile + lax.broadcasted_iota(jnp.int32, p.shape, 1)
            valid = col < s_total
            accumulate(jnp.where(valid, p, 0.0), jnp.where(valid, t, 0.0))
    else:
        accumulate(p_ref[...].astype(jnp.float32),
                   t_ref[...].astype(jnp.float32))


@functools.partial(
    jax.jit,
    static_argnames=("fold", "tile", "nsplit", "sps", "num_tiles",
                     "first_masked", "need_mask", "vmem_limit"))
def _dice_loss_impl(pred, target, *, fold, tile, nsplit, sps, num_tiles,
                    first_masked, need_mask, vmem_limit):
    B, C = pred.shape[0], pred.shape[1]
    S = int(np.prod(pred.shape[2:]))
    BC = B * C
    rows = BC * fold
    s_eff = S // fold

    p = pred.reshape(rows, s_eff)      # contiguous reshape: no HBM copy
    t = target.reshape(rows, s_eff)

    kernel = functools.partial(
        _dice_sums_kernel, s_total=s_eff, tile=tile, sps=sps,
        first_masked=first_masked, need_mask=need_mask)

    def in_map(par, s):
        # Clamp so redundant steps of the last split re-read a valid tile
        # (their contribution is masked to zero inside the kernel).
        return (0, jnp.minimum(par * sps + s, num_tiles - 1))

    sums = pl.pallas_call(
        kernel,
        out_shape=jax.ShapeDtypeStruct((nsplit, rows, 2), jnp.float32),
        grid_spec=pltpu.PrefetchScalarGridSpec(
            num_scalar_prefetch=0,
            grid=(nsplit, sps),
            in_specs=[
                pl.BlockSpec((rows, tile), in_map),
                pl.BlockSpec((rows, tile), in_map),
            ],
            out_specs=pl.BlockSpec((None, rows, 2), lambda par, s: (par, 0, 0)),
        ),
        compiler_params=pltpu.CompilerParams(
            dimension_semantics=("parallel", "arbitrary"),
            vmem_limit_bytes=vmem_limit),
    )(p, t)

    sums = jnp.sum(sums, axis=0)                      # combine splits -> (rows, 2)
    sums = sums.reshape(BC, fold, 2).sum(axis=1)      # un-fold rows    -> (BC, 2)
    inter = sums[:, 0].reshape(B, C)
    denom = sums[:, 1].reshape(B, C)                  # = pred_sum + target_sum

    smooth = 1.0
    # Sum over channels then divide by C (matches the PyTorch loop + `/ C`).
    dice = jnp.sum(2.0 * inter / (denom + smooth), axis=1) / C   # (B,)
    loss = 1.0 - dice
    return jnp.mean(loss)


def dice_loss(pred, target, *, tile=None):
    """Pallas implementation of DiceLoss.forward(pred, target)."""
    assert pred.shape == target.shape
    B, C = int(pred.shape[0]), int(pred.shape[1])
    S = int(np.prod(pred.shape[2:]))
    BC = B * C
    itemsize = int(jnp.dtype(pred.dtype).itemsize)

    # Fold a small spatial factor into the row axis so rows fill all 8
    # sublanes when B*C is not a multiple of 8 (free contiguous reshape).
    fold = 1
    if BC % 8 != 0:
        for f in (2, 4, 8):
            if (BC * f) % 8 == 0 and S % f == 0:
                fold = f
                break
    rows = BC * fold
    s_eff = S // fold

    vmem_cap = _vmem_capacity_bytes()

    if tile is None:
        # Budget the block in f32-equivalent bytes (kernel widens to f32):
        # ~16 MiB/block on 128-MiB v5e/v6e, ~8 MiB/block on 64-MiB v7x.
        per_block_f32 = vmem_cap // 8
        tile = max(128, (per_block_f32 // (rows * 4)) // 128 * 128)
    # Lane-aligned, and no larger than the (rounded-up) spatial extent.
    tile = min(int(tile), _round_up(s_eff, 128))
    tile = max(128, (tile // 128) * 128)

    num_tiles = -(-s_eff // tile)
    nsplit = max(1, min(_num_tensorcores(), num_tiles))   # 1 on v5e/v6e
    sps = -(-num_tiles // nsplit)                          # spatial steps/split
    need_mask = (s_eff % tile != 0) or (nsplit * sps != num_tiles)
    # Tiles with linear index >= first_masked take the masked slow path.
    first_masked = num_tiles - 1 if (s_eff % tile != 0) else num_tiles

    block_in = rows * tile * itemsize     # native-dtype pipeline buffers
    block_f32 = rows * tile * 4           # widened in-kernel copies / temps
    vmem_limit = int(min(
        max(4 * block_in + 2 * block_f32 + (16 << 20), 32 << 20),
        max(vmem_cap * 9 // 10, 32 << 20)))

    return _dice_loss_impl(
        pred, target, fold=fold, tile=tile, nsplit=nsplit, sps=sps,
        num_tiles=num_tiles, first_masked=first_masked, need_mask=need_mask,
        vmem_limit=vmem_limit)


def _reference_dice_loss(pred, target):
    """Pure-JAX reference with the exact PyTorch reduction order."""
    B, C = pred.shape[0], pred.shape[1]
    smooth = 1.0
    dice = jnp.zeros((B,), jnp.float32)
    for i in range(C):
        p = pred[:, i].reshape(B, -1)
        t = target[:, i].reshape(B, -1)
        dice = dice + 2.0 * jnp.sum(p * t, axis=1) / (
            jnp.sum(p, axis=1) + jnp.sum(t, axis=1) + smooth)
    dice = dice / C
    return jnp.mean(1.0 - dice)


if __name__ == "__main__":
    key = jax.random.PRNGKey(0)
    k1, k2, k3, k4, k5, k6 = jax.random.split(key, 6)

    # Small 5-D shapes consistent with the module: [B, C, D, H, W].
    B, C, D, H, W = 2, 4, 8, 16, 16
    pred = jax.nn.sigmoid(jax.random.normal(k1, (B, C, D, H, W), jnp.float32))
    target = (jax.random.uniform(k2, (B, C, D, H, W)) > 0.5).astype(jnp.float32)

    out = jax.block_until_ready(dice_loss(pred, target))
    ref = _reference_dice_loss(pred, target)
    np.testing.assert_allclose(np.asarray(out), np.asarray(ref),
                               rtol=1e-5, atol=1e-5)

    # Ragged spatial size + forced small tile: exercises the pl.when-gated
    # tail masking (and the parallel spatial split on dual-TC chips).
    B2, C2, D2, H2, W2 = 2, 3, 5, 7, 11
    pred2 = jax.nn.sigmoid(
        jax.random.normal(k3, (B2, C2, D2, H2, W2), jnp.float32))
    target2 = (jax.random.uniform(k4, (B2, C2, D2, H2, W2)) > 0.5).astype(
        jnp.float32)

    out2 = jax.block_until_ready(dice_loss(pred2, target2, tile=128))
    ref2 = _reference_dice_loss(pred2, target2)
    np.testing.assert_allclose(np.asarray(out2), np.asarray(ref2),
                               rtol=1e-5, atol=1e-5)

    # B*C not a multiple of 8: exercises the row-fold path (rows = 8*BC).
    B3, C3, D3, H3, W3 = 1, 3, 8, 16, 16
    pred3 = jax.nn.sigmoid(
        jax.random.normal(k5, (B3, C3, D3, H3, W3), jnp.float32))
    target3 = (jax.random.uniform(k6, (B3, C3, D3, H3, W3)) > 0.5).astype(
        jnp.float32)

    out3 = jax.block_until_ready(dice_loss(pred3, target3))
    ref3 = _reference_dice_loss(pred3, target3)
    np.testing.assert_allclose(np.asarray(out3), np.asarray(ref3),
                               rtol=1e-5, atol=1e-5)

    print("KERNEL_OK")
</pallas_src>

<mosaic_0001>
module attributes {stable_mosaic.version = 11 : i64} {
  func.func @_dice_sums_kernel(%arg0: i32, %arg1: i32, %arg2: memref<8x2048xf32, #tpu.memory_space<vmem>>, %arg3: memref<8x2048xf32, #tpu.memory_space<vmem>>, %arg4: memref<1x8x2xf32, #tpu.memory_space<vmem>>) attributes {dimension_semantics = [#tpu.dimension_semantics<parallel>, #tpu.dimension_semantics<arbitrary>], iteration_bounds = array<i64: 1, 1>, scalar_prefetch = 0 : i64, scratch_operands = 0 : i64, tpu.core_type = #tpu.core_type<tc>, window_params = [{transform_indices = @transform_0, window_bounds = array<i64: 8, 2048>}, {transform_indices = @transform_1, window_bounds = array<i64: 8, 2048>}, {transform_indices = @transform_2, window_bounds = array<i64: 1, 8, 2>}]} {
    %c0_i32 = arith.constant 0 : i32
    %0 = arith.cmpi eq, %arg1, %c0_i32 : i32
    %1 = arith.extui %0 : i1 to i32
    %c0_i32_0 = arith.constant 0 : i32
    %2 = arith.cmpi ne, %1, %c0_i32_0 : i32
    scf.if %2 {
      %cst_16 = arith.constant 0.000000e+00 : f32
      %23 = vector.broadcast %cst_16 : f32 to vector<8x2xf32>
      %c0_17 = arith.constant 0 : index
      %c0_18 = arith.constant 0 : index
      %c0_19 = arith.constant 0 : index
      %24 = vector.load %arg4[%c0_17, %c0_18, %c0_19] : memref<1x8x2xf32, #tpu.memory_space<vmem>>, vector<1x8x2xf32>
      %25 = vector.shape_cast %24 : vector<1x8x2xf32> to vector<8x2xf32>
      %26 = vector.shape_cast %23 : vector<8x2xf32> to vector<1x8x2xf32>
      tpu.vector_store %arg4[%c0_17, %c0_18, %c0_19], %26 {strides = array<i32>} : memref<1x8x2xf32, #tpu.memory_space<vmem>>, vector<1x8x2xf32>,
    } else {
    }
    %c0 = arith.constant 0 : index
    %c0_1 = arith.constant 0 : index
    %3 = vector.load %arg2[%c0, %c0_1] : memref<8x2048xf32, #tpu.memory_space<vmem>>, vector<8x2048xf32>
    %c0_2 = arith.constant 0 : index
    %c0_3 = arith.constant 0 : index
    %4 = vector.load %arg3[%c0_2, %c0_3] : memref<8x2048xf32, #tpu.memory_space<vmem>>, vector<8x2048xf32>
    %c0_4 = arith.constant 0 : index
    %c0_5 = arith.constant 0 : index
    %c0_6 = arith.constant 0 : index
    %5 = vector.load %arg4[%c0_4, %c0_5, %c0_6] : memref<1x8x2xf32, #tpu.memory_space<vmem>>, vector<1x8x1xf32>
    %6 = vector.shape_cast %5 : vector<1x8x1xf32> to vector<8x1xf32>
    %7 = arith.mulf %3, %4 : vector<8x2048xf32>
    %cst = arith.constant dense<0.000000e+00> : vector<8xf32>
    %8 = vector.multi_reduction <add>, %7, %cst [1] : vector<8x2048xf32> to vector<8xf32>
    %9 = vector.shape_cast %8 : vector<8xf32> to vector<8x1xf32>
    %10 = arith.addf %6, %9 : vector<8x1xf32>
    %c0_7 = arith.constant 0 : index
    %c0_8 = arith.constant 0 : index
    %c0_9 = arith.constant 0 : index
    %11 = vector.load %arg4[%c0_7, %c0_8, %c0_9] : memref<1x8x2xf32, #tpu.memory_space<vmem>>, vector<1x8x1xf32>
    %12 = vector.shape_cast %11 : vector<1x8x1xf32> to vector<8x1xf32>
    %13 = vector.shape_cast %10 : vector<8x1xf32> to vector<1x8x1xf32>
    tpu.vector_store %arg4[%c0_7, %c0_8, %c0_9], %13 {strides = array<i32>} : memref<1x8x2xf32, #tpu.memory_space<vmem>>, vector<1x8x1xf32>,
    %c0_10 = arith.constant 0 : index
    %c0_11 = arith.constant 0 : index
    %c1 = arith.constant 1 : index
    %14 = vector.load %arg4[%c0_10, %c0_11, %c1] : memref<1x8x2xf32, #tpu.memory_space<vmem>>, vector<1x8x1xf32>
    %15 = vector.shape_cast %14 : vector<1x8x1xf32> to vector<8x1xf32>
    %16 = arith.addf %3, %4 : vector<8x2048xf32>
    %cst_12 = arith.constant dense<0.000000e+00> : vector<8xf32>
    %17 = vector.multi_reduction <add>, %16, %cst_12 [1] : vector<8x2048xf32> to vector<8xf32>
    %18 = vector.shape_cast %17 : vector<8xf32> to vector<8x1xf32>
    %19 = arith.addf %15, %18 : vector<8x1xf32>
    %c0_13 = arith.constant 0 : index
    %c0_14 = arith.constant 0 : index
    %c1_15 = arith.constant 1 : index
    %20 = vector.load %arg4[%c0_13, %c0_14, %c1_15] : memref<1x8x2xf32, #tpu.memory_space<vmem>>, vector<1x8x1xf32>
    %21 = vector.shape_cast %20 : vector<1x8x1xf32> to vector<8x1xf32>
    %22 = vector.shape_cast %19 : vector<8x1xf32> to vector<1x8x1xf32>
    tpu.vector_store %arg4[%c0_13, %c0_14, %c1_15], %22 {strides = array<i32>} : memref<1x8x2xf32, #tpu.memory_space<vmem>>, vector<1x8x1xf32>,
    return
  }
  func.func @transform_0(%arg0: i32, %arg1: i32) -> (i32, i32) {
    %c1_i32 = arith.constant 1 : i32
    %0 = arith.muli %arg0, %c1_i32 : i32
    %1 = arith.addi %0, %arg1 : i32
    %c0_i32 = arith.constant 0 : i32
    %2 = arith.minsi %1, %c0_i32 : i32
    %c0_i32_0 = arith.constant 0 : i32
    %c0_i32_1 = arith.constant 0 : i32
    return %c0_i32_0, %2 : i32, i32
  }
  func.func @transform_1(%arg0: i32, %arg1: i32) -> (i32, i32) {
    %c1_i32 = arith.constant 1 : i32
    %0 = arith.muli %arg0, %c1_i32 : i32
    %1 = arith.addi %0, %arg1 : i32
    %c0_i32 = arith.constant 0 : i32
    %2 = arith.minsi %1, %c0_i32 : i32
    %c0_i32_0 = arith.constant 0 : i32
    %c0_i32_1 = arith.constant 0 : i32
    return %c0_i32_0, %2 : i32, i32
  }
  func.func @transform_2(%arg0: i32, %arg1: i32) -> (i32, i32, i32) {
    %c0_i32 = arith.constant 0 : i32
    %c0_i32_0 = arith.constant 0 : i32
    %c0_i32_1 = arith.constant 0 : i32
    return %arg0, %c0_i32, %c0_i32_0 : i32, i32, i32
  }
}

</mosaic_0001>

<bundles_post_ra>
// kernel: _dice_loss_impl.1
= control target key start
LH: loop header
LB: loop body
LE: loop exit
PB: predicated region body
PF: predicated region fallthrough
CT: control target
= control target key end

     0   :  { %vm79_vm0 = vcmask 15360   ;;  %v204_v36 = vmov 0.0   ;;  %vm148_vm1 = vcmask 7168   ;;  %vm185_vm2 = vcmask 15368   ;;  %s331_s0 = inlined_call_operand.vmem [shape: f32[8,2048], index: 0, kind: input, shape index: {}]   ;;  %s332_s1 = inlined_call_operand.vmem [shape: f32[8,2048], index: 1, kind: input, shape index: {}]   ;;  %s333_s2 = inlined_call_operand.vmem [shape: f32[1,8,2], index: 2, kind: output, shape index: {}]  }
   0x1   :  { %v81_v0 = vld [vmem:[%s331_s0] sm:$0xff]  ;;  %v82_v1 = vld [vmem:[%s331_s0 + $0x8] sm:$0xff]  ;;  %v83_v2 = vld [vmem:[%s331_s0 + $0x10] sm:$0xff]  ;;  %80 = vst.msk [vmem:[%s333_s2] sm:$0xff] %vm79_vm0, %v204_v36 }
   0x2   :  { %v84_v3 = vld [vmem:[%s331_s0 + $0x18] sm:$0xff]  ;;  %v97_v4 = vld [vmem:[%s332_s1] sm:$0xff]  ;;  %v98_v5 = vld [vmem:[%s332_s1 + $0x8] sm:$0xff] }
   0x3   :  { %v99_v6 = vld [vmem:[%s332_s1 + $0x10] sm:$0xff]  ;;  %v100_v7 = vld [vmem:[%s332_s1 + $0x18] sm:$0xff]  ;;  %v114_v8 = vmul.f32 %v97_v4, %v81_v0  ;;  %v115_v9 = vmul.f32 %v98_v5, %v82_v1  ;;  %v85_v10 = vld [vmem:[%s331_s0 + $0x20] sm:$0xff]  ;;  %v151_v21 = vadd.f32 %v97_v4, %v81_v0  ;;  %v152_v22 = vadd.f32 %v98_v5, %v82_v1 }
   0x4   :  { %v101_v11 = vld [vmem:[%s332_s1 + $0x20] sm:$0xff]  ;;  %v116_v12 = vmul.f32 %v99_v6, %v83_v2  ;;  %v117_v13 = vmul.f32 %v100_v7, %v84_v3  ;;  %v86_v15 = vld [vmem:[%s331_s0 + $0x28] sm:$0xff]  ;;  %v87_v19 = vld [vmem:[%s331_s0 + $0x30] sm:$0xff]  ;;  %v153_v27 = vadd.f32 %v99_v6, %v83_v2  ;;  %v154_v32 = vadd.f32 %v100_v7, %v84_v3 }
   0x5   :  { %v130_v14 = vadd.f32 %v115_v9, %v114_v8  ;;  %v102_v16 = vld [vmem:[%s332_s1 + $0x28] sm:$0xff]  ;;  %v118_v17 = vmul.f32 %v101_v11, %v85_v10  ;;  %v103_v20 = vld [vmem:[%s332_s1 + $0x30] sm:$0xff]  ;;  %v88_v25 = vld [vmem:[%s331_s0 + $0x38] sm:$0xff]  ;;  %v167_v33 = vadd.f32 %v152_v22, %v151_v21  ;;  %v155_v39 = vadd.f32 %v101_v11, %v85_v10 }
   0x6   :  { %v119_v23 = vmul.f32 %v102_v16, %v86_v15  ;;  %v104_v26 = vld [vmem:[%s332_s1 + $0x38] sm:$0xff]  ;;  %v120_v28 = vmul.f32 %v103_v20, %v87_v19  ;;  %v89_v30 = vld [vmem:[%s331_s0 + $0x40] sm:$0xff]  ;;  %v90_v37 = vld [vmem:[%s331_s0 + $0x48] sm:$0xff]  ;;  %v156_v45 = vadd.f32 %v102_v16, %v86_v15  ;;  %v157_v51 = vadd.f32 %v103_v20, %v87_v19 }
   0x7   :  { %v131_v18 = vadd.f32 %v130_v14, %v116_v12  ;;  %v105_v31 = vld [vmem:[%s332_s1 + $0x40] sm:$0xff]  ;;  %v121_v34 = vmul.f32 %v104_v26, %v88_v25  ;;  %v106_v38 = vld [vmem:[%s332_s1 + $0x48] sm:$0xff]  ;;  %v168_v40 = vadd.f32 %v167_v33, %v153_v27  ;;  %v91_v43 = vld [vmem:[%s331_s0 + $0x50] sm:$0xff]  ;;  %v158_v57 = vadd.f32 %v104_v26, %v88_v25 }
   0x8   :  { %v122_v41 = vmul.f32 %v105_v31, %v89_v30  ;;  %v107_v44 = vld [vmem:[%s332_s1 + $0x50] sm:$0xff]  ;;  %v123_v47 = vmul.f32 %v106_v38, %v90_v37  ;;  %v92_v49 = vld [vmem:[%s331_s0 + $0x58] sm:$0xff]  ;;  %v93_v55 = vld [vmem:[%s331_s0 + $0x60] sm:$0xff]  ;;  %v159_v63 = vadd.f32 %v105_v31, %v89_v30  ;;  %v160_v5 = vadd.f32 %v106_v38, %v90_v37 }
   0x9   :  { %v132_v24 = vadd.f32 %v131_v18, %v117_v13  ;;  %v169_v46 = vadd.f32 %v168_v40, %v154_v32  ;;  %v108_v50 = vld [vmem:[%s332_s1 + $0x58] sm:$0xff]  ;;  %v124_v53 = vmul.f32 %v107_v44, %v91_v43  ;;  %v109_v56 = vld [vmem:[%s332_s1 + $0x60] sm:$0xff]  ;;  %v94_v61 = vld [vmem:[%s331_s0 + $0x68] sm:$0xff]  ;;  %v161_v11 = vadd.f32 %v107_v44, %v91_v43 }
   0xa   :  { %v125_v59 = vmul.f32 %v108_v50, %v92_v49  ;;  %v110_v62 = vld [vmem:[%s332_s1 + $0x68] sm:$0xff]  ;;  %v126_v1 = vmul.f32 %v109_v56, %v93_v55  ;;  %v95_v3 = vld [vmem:[%s331_s0 + $0x70] sm:$0xff]  ;;  %v96_v9 = vld [vmem:[%s331_s0 + $0x78] sm:$0xff]  ;;  %v162_v15 = vadd.f32 %v108_v50, %v92_v49  ;;  %v163_v19 = vadd.f32 %v109_v56, %v93_v55 }
   0xb   :  { %v133_v29 = vadd.f32 %v132_v24, %v118_v17  ;;  %v170_v52 = vadd.f32 %v169_v46, %v155_v39  ;;  %v111_v4 = vld [vmem:[%s332_s1 + $0x70] sm:$0xff]  ;;  %v127_v7 = vmul.f32 %v110_v62, %v94_v61  ;;  %v112_v10 = vld [vmem:[%s332_s1 + $0x78] sm:$0xff]  ;;  %v164_v22 = vadd.f32 %v110_v62, %v94_v61  ;;  %v113_v31 = vld [vmem:[%s333_s2] sm:$0xff] }
   0xc   :  { %v128_v13 = vmul.f32 %v111_v4, %v95_v3  ;;  %v129_v17 = vmul.f32 %v112_v10, %v96_v9  ;;  %v165_v25 = vadd.f32 %v111_v4, %v95_v3  ;;  %v166_v27 = vadd.f32 %v112_v10, %v96_v9 }
   0xd   :  { %v134_v35 = vadd.f32 %v133_v29, %v119_v23  ;;  %v171_v58 = vadd.f32 %v170_v52, %v156_v45 }
   0xf   :  { %v135_v42 = vadd.f32 %v134_v35, %v120_v28  ;;  %v172_v0 = vadd.f32 %v171_v58, %v157_v51 }
  0x11   :  { %v136_v48 = vadd.f32 %v135_v42, %v121_v34  ;;  %v173_v6 = vadd.f32 %v172_v0, %v158_v57 }
  0x13   :  { %v137_v54 = vadd.f32 %v136_v48, %v122_v41  ;;  %v174_v12 = vadd.f32 %v173_v6, %v159_v63 }
  0x15   :  { %v138_v60 = vadd.f32 %v137_v54, %v123_v47  ;;  %v175_v16 = vadd.f32 %v174_v12, %v160_v5 }
  0x17   :  { %v139_v2 = vadd.f32 %v138_v60, %v124_v53  ;;  %v176_v20 = vadd.f32 %v175_v16, %v161_v11 }
  0x19   :  { %v140_v8 = vadd.f32 %v139_v2, %v125_v59  ;;  %v177_v23 = vadd.f32 %v176_v20, %v162_v15 }
  0x1b   :  { %v141_v14 = vadd.f32 %v140_v8, %v126_v1  ;;  %v178_v26 = vadd.f32 %v177_v23, %v163_v19 }
  0x1d   :  { %v142_v18 = vadd.f32 %v141_v14, %v127_v7  ;;  %v179_v28 = vadd.f32 %v178_v26, %v164_v22 }
  0x1f   :  { %v143_v21 = vadd.f32 %v142_v18, %v128_v13  ;;  %v180_v29 = vadd.f32 %v179_v28, %v165_v25 }
  0x21   :  { %v144_v24 = vadd.f32 %v143_v21, %v129_v17  ;;  %v181_v30 = vadd.f32 %v180_v29, %v166_v27 }
  0x23   :  { %145 = vadd.xlane.f32.xlu0 %v144_v24 }
  0x2b   :  { %182 = vadd.xlane.f32.xlu0 %v181_v30 }
  0x96   :  { %v146_v32 = vpop.xlane.xlu0 %145 }
  0x97   :  { %v147_v33 = vadd.f32 %v146_v32, %v113_v31 }
  0x99   :  { %149 = vst.msk [vmem:[%s333_s2] sm:$0xff] %vm148_vm1, %v147_v33 }
  0x9e   :  { %v183_v34 = vpop.xlane.xlu0 %182 }
  0xa0   :  { %v150_v35 = vld [vmem:[%s333_s2] sm:$0xff] }
  0xa1   :  { %v184_v36 = vadd.f32 %v183_v34, %v150_v35 }
  0xa3   :  { %186 = vst.msk [vmem:[%s333_s2] sm:$0xff] %vm185_vm2, %v184_v36 }

</bundles_post_ra>
